<compile_context>
chip_gen: v7x
topology: tpu7x:2x2x1
jax: 0.10.0
libtpu: 0.0.40
codegen_flags: <defaults>
</compile_context>

<pallas_src>
import jax
import jax.numpy as jnp
from jax.experimental import pallas as pl
from jax.experimental.pallas import tpu as pltpu


def _round_up(x, m):
    return ((x + m - 1) // m) * m


# -----------------------------------------------------------------------------
# Pallas kernel: fused 2-layer MLP  (Linear -> ReLU -> Linear -> Sigmoid)
# -----------------------------------------------------------------------------
def _decoder_mlp_kernel(z_ref, w0_ref, b0_ref, w1_ref, b1_ref, out_ref):
    # z_ref : (TB, Kp)   bf16, lane-dense (Kp is a multiple of 128)
    # w0_ref: (Kp, H0)   bf16, pre-transposed, zero-padded rows
    # b0_ref: (1, H0)    f32
    # w1_ref: (H0, H1)   bf16, pre-transposed
    # b1_ref: (1, H1)    f32
    # out_ref: (TB, H1)  f32
    z = z_ref[...]

    # fc0 + ReLU (bf16 MXU matmul, f32 accumulate, f32 elementwise)
    h = jnp.dot(z, w0_ref[...], preferred_element_type=jnp.float32)
    h = jnp.maximum(h + b0_ref[...], 0.0)

    # fc1 + Sigmoid
    o = jnp.dot(h.astype(jnp.bfloat16), w1_ref[...],
                preferred_element_type=jnp.float32)
    o = jax.nn.sigmoid(o + b1_ref[...])

    out_ref[...] = o.astype(out_ref.dtype)


def decoder_mlp_pallas(z_pad, w0, b0, w1, b1, *, block_b=512):
    """Fused MLP over a batch grid. Weights/biases stay resident across the grid."""
    B, Kp = z_pad.shape
    H0 = w0.shape[1]
    H1 = w1.shape[1]
    TB = B if B <= block_b else block_b          # full-dim block for small B, 512 otherwise
    grid = (pl.cdiv(B, TB),)

    return pl.pallas_call(
        _decoder_mlp_kernel,
        out_shape=jax.ShapeDtypeStruct((B, H1), jnp.float32),
        grid_spec=pltpu.PrefetchScalarGridSpec(
            num_scalar_prefetch=0,
            grid=grid,
            in_specs=[
                pl.BlockSpec((TB, Kp), lambda i: (i, 0)),   # activation tile (pipelined)
                pl.BlockSpec((Kp, H0), lambda i: (0, 0)),   # fc0 weight (resident)
                pl.BlockSpec((1, H0), lambda i: (0, 0)),    # fc0 bias
                pl.BlockSpec((H0, H1), lambda i: (0, 0)),   # fc1 weight (resident)
                pl.BlockSpec((1, H1), lambda i: (0, 0)),    # fc1 bias
            ],
            out_specs=pl.BlockSpec((TB, H1), lambda i: (i, 0)),
        ),
        compiler_params=pltpu.CompilerParams(
            dimension_semantics=("parallel",),              # batch axis -> megacore split
        ),
    )(z_pad, w0, b0, w1, b1)


# -----------------------------------------------------------------------------
# Glue: idx2onehot + concat + parameter container (mirrors the PyTorch module)
# -----------------------------------------------------------------------------
def idx2onehot(idx, n):
    # No host-syncing assert: keep this fully traceable / async-dispatch friendly.
    if idx.ndim == 2:
        idx = idx[:, 0]
    return jax.nn.one_hot(idx, n, dtype=jnp.float32)


class DecoderPallas:
    """Mirror of the PyTorch Decoder: MLP over [z | onehot(c)]."""

    def __init__(self, layer_size, latent_size, conditional, num_labels, key):
        assert len(layer_size) == 2, "this kernel fuses exactly 2 Linear layers"
        self.conditional = conditional
        self.num_labels = num_labels
        in_size = latent_size + num_labels if conditional else latent_size
        self.in_size = in_size
        self.in_pad = _round_up(in_size, 128)    # lane-dense contraction dim
        sizes = [in_size] + list(layer_size)

        # Deterministic init (PyTorch-Linear-like uniform fan-in scaling).
        keys = jax.random.split(key, 2 * len(layer_size))
        params_f32 = []
        for i in range(len(layer_size)):
            fan_in = sizes[i]
            bound = 1.0 / (fan_in ** 0.5)
            # Pre-transposed storage: [in_features, out_features] -> no .T in kernel.
            w = jax.random.uniform(keys[2 * i], (sizes[i], sizes[i + 1]),
                                   jnp.float32, -bound, bound)
            b = jax.random.uniform(keys[2 * i + 1], (1, sizes[i + 1]),
                                   jnp.float32, -bound, bound)
            params_f32.append((w, b))
        self.params_f32 = params_f32             # f32 copies for reference checking

        (w0, b0), (w1, b1) = params_f32
        # Zero-pad fc0's input dim to the padded width, cast matmul operands to bf16.
        w0p = jnp.zeros((self.in_pad, w0.shape[1]), jnp.float32).at[:in_size].set(w0)
        self.w0 = w0p.astype(jnp.bfloat16)
        self.b0 = b0
        self.w1 = w1.astype(jnp.bfloat16)
        self.b1 = b1

        self._fwd = jax.jit(self._forward)

    def _forward(self, z, c):
        if self.conditional:
            c1h = idx2onehot(c, self.num_labels)
            z = jnp.concatenate([z, c1h], axis=-1)
        # Zero-pad the feature axis to match the zero-padded rows of w0.
        z = jnp.pad(z, ((0, 0), (0, self.in_pad - z.shape[-1])))
        z = z.astype(jnp.bfloat16)
        return decoder_mlp_pallas(z, self.w0, self.b0, self.w1, self.b1)

    def __call__(self, z, c=None):
        return self._fwd(z, c)


# -----------------------------------------------------------------------------
# Pure-JAX f32 reference for sanity checking
# -----------------------------------------------------------------------------
def _reference(z, c, dec):
    x = z
    if dec.conditional:
        c1h = idx2onehot(c, dec.num_labels)
        x = jnp.concatenate([z, c1h], axis=-1)
    (w0, b0), (w1, b1) = dec.params_f32
    h = jnp.maximum(x @ w0 + b0, 0.0)
    return jax.nn.sigmoid(h @ w1 + b1)


if __name__ == "__main__":
    key = jax.random.PRNGKey(0)
    k_z, k_c, k_p = jax.random.split(key, 3)

    batch = 8
    latent_size = 16
    num_labels = 10
    layer_size = [64, 128]          # hidden -> output (sigmoid on last layer)

    z = jax.random.normal(k_z, (batch, latent_size), dtype=jnp.float32)
    c = jax.random.randint(k_c, (batch,), 0, num_labels, dtype=jnp.int32)

    dec = DecoderPallas(layer_size, latent_size, conditional=True,
                        num_labels=num_labels, key=k_p)

    out = dec(z, c)
    out = jax.block_until_ready(out)

    ref = _reference(z, c, dec)
    assert out.shape == (batch, layer_size[-1])
    # bf16 matmul operands (f32 accumulate) vs f32 reference -> loosened tolerance.
    assert jnp.allclose(out, ref, atol=2e-2, rtol=2e-2), float(jnp.max(jnp.abs(out - ref)))

    print("KERNEL_OK")
</pallas_src>

<mosaic_0001>
module attributes {stable_mosaic.version = 11 : i64} {
  func.func @_decoder_mlp_kernel(%arg0: i32, %arg1: memref<8x128xbf16, #tpu.memory_space<vmem>>, %arg2: memref<128x64xbf16, #tpu.memory_space<vmem>>, %arg3: memref<1x64xf32, #tpu.memory_space<vmem>>, %arg4: memref<64x128xbf16, #tpu.memory_space<vmem>>, %arg5: memref<1x128xf32, #tpu.memory_space<vmem>>, %arg6: memref<8x128xf32, #tpu.memory_space<vmem>>) attributes {dimension_semantics = [#tpu.dimension_semantics<parallel>], iteration_bounds = array<i64: 1>, scalar_prefetch = 0 : i64, scratch_operands = 0 : i64, tpu.core_type = #tpu.core_type<tc>, window_params = [{transform_indices = @transform_0, window_bounds = array<i64: 8, 128>}, {pipeline_mode = #tpu.pipeline_mode<synchronous>, transform_indices = @transform_1, window_bounds = array<i64: 128, 64>}, {pipeline_mode = #tpu.pipeline_mode<synchronous>, transform_indices = @transform_2, window_bounds = array<i64: 1, 64>}, {pipeline_mode = #tpu.pipeline_mode<synchronous>, transform_indices = @transform_3, window_bounds = array<i64: 64, 128>}, {pipeline_mode = #tpu.pipeline_mode<synchronous>, transform_indices = @transform_4, window_bounds = array<i64: 1, 128>}, {transform_indices = @transform_5, window_bounds = array<i64: 8, 128>}]} {
    %c0 = arith.constant 0 : index
    %c0_0 = arith.constant 0 : index
    %0 = vector.load %arg1[%c0, %c0_0] : memref<8x128xbf16, #tpu.memory_space<vmem>>, vector<8x128xbf16>
    %c0_1 = arith.constant 0 : index
    %c0_2 = arith.constant 0 : index
    %1 = vector.load %arg2[%c0_1, %c0_2] : memref<128x64xbf16, #tpu.memory_space<vmem>>, vector<128x64xbf16>
    %cst = arith.constant dense<0.000000e+00> : vector<8x64xf32>
    %2 = tpu.matmul %0, %1, %cst {dimension_numbers = #tpu.dot_dimension_numbers<[1], [0], [0], [1], [0, 0, 1, 1], [], []>} : vector<8x128xbf16>, vector<128x64xbf16>, vector<8x64xf32> -> vector<8x64xf32>
    %c0_3 = arith.constant 0 : index
    %c0_4 = arith.constant 0 : index
    %3 = vector.load %arg3[%c0_3, %c0_4] : memref<1x64xf32, #tpu.memory_space<vmem>>, vector<1x64xf32>
    %4 = vector.broadcast %3 : vector<1x64xf32> to vector<8x64xf32>
    %5 = arith.addf %2, %4 : vector<8x64xf32>
    %cst_5 = arith.constant 0.000000e+00 : f32
    %6 = vector.broadcast %cst_5 : f32 to vector<8x64xf32>
    %7 = arith.maximumf %5, %6 : vector<8x64xf32>
    %8 = arith.truncf %7 : vector<8x64xf32> to vector<8x64xbf16>
    %c0_6 = arith.constant 0 : index
    %c0_7 = arith.constant 0 : index
    %9 = vector.load %arg4[%c0_6, %c0_7] : memref<64x128xbf16, #tpu.memory_space<vmem>>, vector<64x128xbf16>
    %cst_8 = arith.constant dense<0.000000e+00> : vector<8x128xf32>
    %10 = tpu.matmul %8, %9, %cst_8 {dimension_numbers = #tpu.dot_dimension_numbers<[1], [0], [0], [1], [0, 0, 1, 1], [], []>} : vector<8x64xbf16>, vector<64x128xbf16>, vector<8x128xf32> -> vector<8x128xf32>
    %c0_9 = arith.constant 0 : index
    %c0_10 = arith.constant 0 : index
    %11 = vector.load %arg5[%c0_9, %c0_10] : memref<1x128xf32, #tpu.memory_space<vmem>>, vector<1x128xf32>
    %12 = vector.broadcast %11 : vector<1x128xf32> to vector<8x128xf32>
    %13 = arith.addf %10, %12 : vector<8x128xf32>
    %14 = arith.negf %13 : vector<8x128xf32>
    %15 = math.exp %14 : vector<8x128xf32>
    %cst_11 = arith.constant 1.000000e+00 : f32
    %16 = vector.broadcast %cst_11 : f32 to vector<8x128xf32>
    %17 = arith.addf %16, %15 : vector<8x128xf32>
    %18 = arith.divf %16, %17 : vector<8x128xf32>
    %c0_12 = arith.constant 0 : index
    %c0_13 = arith.constant 0 : index
    %19 = vector.load %arg6[%c0_12, %c0_13] : memref<8x128xf32, #tpu.memory_space<vmem>>, vector<8x128xf32>
    tpu.vector_store %arg6[%c0_12, %c0_13], %18 {strides = array<i32>} : memref<8x128xf32, #tpu.memory_space<vmem>>, vector<8x128xf32>,
    return
  }
  func.func @transform_0(%arg0: i32) -> (i32, i32) {
    %c0_i32 = arith.constant 0 : i32
    %c0_i32_0 = arith.constant 0 : i32
    return %arg0, %c0_i32 : i32, i32
  }
  func.func @transform_1(%arg0: i32) -> (i32, i32) {
    %c0_i32 = arith.constant 0 : i32
    %c0_i32_0 = arith.constant 0 : i32
    %c0_i32_1 = arith.constant 0 : i32
    return %c0_i32, %c0_i32_0 : i32, i32
  }
  func.func @transform_2(%arg0: i32) -> (i32, i32) {
    %c0_i32 = arith.constant 0 : i32
    %c0_i32_0 = arith.constant 0 : i32
    %c0_i32_1 = arith.constant 0 : i32
    return %c0_i32, %c0_i32_0 : i32, i32
  }
  func.func @transform_3(%arg0: i32) -> (i32, i32) {
    %c0_i32 = arith.constant 0 : i32
    %c0_i32_0 = arith.constant 0 : i32
    %c0_i32_1 = arith.constant 0 : i32
    return %c0_i32, %c0_i32_0 : i32, i32
  }
  func.func @transform_4(%arg0: i32) -> (i32, i32) {
    %c0_i32 = arith.constant 0 : i32
    %c0_i32_0 = arith.constant 0 : i32
    %c0_i32_1 = arith.constant 0 : i32
    return %c0_i32, %c0_i32_0 : i32, i32
  }
  func.func @transform_5(%arg0: i32) -> (i32, i32) {
    %c0_i32 = arith.constant 0 : i32
    %c0_i32_0 = arith.constant 0 : i32
    return %arg0, %c0_i32 : i32, i32
  }
}

</mosaic_0001>

<bundles_post_ra>
// kernel: _forward.1
= control target key start
LH: loop header
LB: loop body
LE: loop exit
PB: predicated region body
PF: predicated region fallthrough
CT: control target
= control target key end

     0   :  { %10 = vsyncpa [#allocation3], 0  ;;  %s468_s0 = inlined_call_operand.vmem [shape: bf16[8,128], index: 0, kind: input, shape index: {}]   ;;  %s469_s1 = inlined_call_operand.hbm [shape: bf16[128,64], index: 1, kind: input, shape index: {}]   ;;  %s470_s2 = inlined_call_operand.vmem [shape: f32[1,64], index: 2, kind: input, shape index: {}]   ;;  %s471_s3 = inlined_call_operand.vmem [shape: bf16[64,128], index: 3, kind: input, shape index: {}]   ;;  %s472_s4 = inlined_call_operand.vmem [shape: f32[1,128], index: 4, kind: input, shape index: {}]   ;;  %s473_s5 = inlined_call_operand.hbm [shape: f32[8,128], index: 5, kind: output, shape index: {}]  }
   0x1   :  { %11 = vsyncpa [#allocation4], 0  ;;  %s387_s18 = smov [#allocation2]   ;;  %s339_s22 = scalar_lea.hbm %s469_s1, 1024 }
   0x2   :  { %s19_s19 = sshll.u32 %s387_s18, 4  ;;  %p340_p0 = scmp.ne.s32.totalorder %s469_s1, %s339_s22  ;;  %s20_s19 = int_to_ptr.vmem [resolvable:$true] %s19_s19 }
   0x3   :  { %p343_p1 = scmp.lt.u32.totalorder %s339_s22, %s469_s1 }
   0x5   :  { %p345_p2 = pnand %p343_p1, %p340_p0 }
   0x7   :  { %348 = shalt.err (!%p345_p2)
}
   0x8   :  { %s349_s27 = scalar_lea.vmem %s20_s19, 1024  ;;  %p354_p4 = scmp.lt.s32.totalorder %s20_s19, %s20_s19 }
   0x9   :  { %p350_p3 = scmp.ne.s32.totalorder %s20_s19, %s349_s27  ;;  %p355_p5 = scmp.lt.s32.totalorder %s349_s27, %s349_s27 }
   0xb   :  { %p356_p6 = por %p355_p5, %p354_p4 }
   0xd   :  { %p357_p7 = pnand %p356_p6, %p350_p3 }
   0xf   :  { %360 = shalt.err (!%p357_p7)
}
  0x10   :  { %s388_s28 = smov 64   ;;  %s389_s29 = smov 4  }
  0x11   :  { %25 = dma.hbm_to_vmem [thread:$0]  %s469_s1, 1024, %s20_s19, [#allocation3], %s388_s28, %s388_s28, %s389_s29  }
  0x12   :  { %383 = dma.done.wait [#allocation3], 1024  }
  0x13   :  { %384 = vsyncadd [#allocation3], 4294966272  ;;  %v390_v0 = vmov 0.0   ;;  %vm391_vm0 = vmmov 0   ;;  %v323_v1 = vld [vmem:[#allocation2] sm:$0xff]   ;;  %v324_v2 = vld [vmem:[#allocation2 + $0x8] sm:$0xff]  }
  0x14   :  { %285 = vmatprep.subr.bf16.mxu0 %v390_v0  ;;  %301 = vmatprep.mubr.msk.bf16.mxu0 %vm391_vm0, %v390_v0  ;;  %v325_v3 = vld [vmem:[#allocation2 + $0x10] sm:$0xff]   ;;  %v331_v4 = vld [vmem:[%s471_s3] sm:$0xff]   ;;  %v326_v5 = vld [vmem:[#allocation2 + $0x18] sm:$0xff]   ;;  %vm189_vm1 = vcmask 523264  }
  0x15   :  { %305 = vmatprep.subr.bf16.mxu1 %v390_v0  ;;  %313 = vmatprep.mubr.msk.bf16.mxu1 %vm391_vm0, %v390_v0  ;;  %v332_v6 = vld [vmem:[%s471_s3 + $0x8] sm:$0xff]   ;;  %v327_v7 = vld [vmem:[#allocation2 + $0x20] sm:$0xff]   ;;  %v329_v9 = vld [vmem:[#allocation2 + $0x30] sm:$0xff]  }
  0x16   :  { %286 = vmatpush3.bf16.msra.mxu0 %v323_v1  ;;  %306 = vmatpush3.bf16.msra.mxu1 %v331_v4  ;;  %v328_v8 = vld [vmem:[#allocation2 + $0x28] sm:$0xff]   ;;  %v330_v10 = vld [vmem:[#allocation2 + $0x38] sm:$0xff]   ;;  %v36_v11 = vld [vmem:[%s468_s0] sm:$0xf] }
  0x17   :  { %287 = vmatprep.subr.bf16.mxu0 %v390_v0  ;;  %307 = vmatprep.subr.bf16.mxu1 %v390_v0  ;;  %v333_v12 = vld [vmem:[%s471_s3 + $0x10] sm:$0xff]   ;;  %v334_v13 = vld [vmem:[%s471_s3 + $0x18] sm:$0xff]   ;;  %v255_v14 = vld [vmem:[%s470_s2] ss:$0 sm:$0xff]  ;;  %s392_s2 = smov [#allocation5]  }
  0x18   :  { %v264_v22 = vld [vmem:[%s472_s4] ss:$0 sm:$0xff]  ;;  %s246_s3 = sshll.u32 %s392_s2, 4  ;;  %s247_s3 = int_to_ptr.vmem [resolvable:$true] %s246_s3 }
  0x19   :  { %s361_s19 = scalar_lea.vmem %s247_s3, 128  ;;  %p366_p9 = scmp.lt.s32.totalorder %s247_s3, %s247_s3 }
  0x1a   :  { %288 = vmatpush3.bf16.msra.mxu0 %v324_v2  ;;  %308 = vmatpush3.bf16.msra.mxu1 %v332_v6  ;;  %p362_p8 = scmp.ne.s32.totalorder %s247_s3, %s361_s19  ;;  %p367_p10 = scmp.lt.s32.totalorder %s361_s19, %s361_s19 }
  0x1b   :  { %289 = vmatprep.subr.bf16.mxu0 %v390_v0  ;;  %309 = vmatprep.subr.bf16.mxu1 %v390_v0 }
  0x1c   :  { %p368_p11 = por %p367_p10, %p366_p9 }
  0x1e   :  { %290 = vmatpush3.bf16.msra.mxu0 %v325_v3  ;;  %310 = vmatpush3.bf16.msra.mxu1 %v333_v12  ;;  %p369_p12 = pnand %p368_p11, %p362_p8 }
  0x1f   :  { %291 = vmatprep.subr.bf16.mxu0 %v390_v0  ;;  %311 = vmatprep.subr.bf16.mxu1 %v390_v0 }
  0x22   :  { %292 = vmatpush3.bf16.msra.mxu0 %v326_v5  ;;  %312 = vmatpush3.bf16.msra.mxu1 %v334_v13 }
  0x23   :  { %293 = vmatprep.subr.bf16.mxu0 %v390_v0 }
  0x26   :  { %294 = vmatpush3.bf16.msra.mxu0 %v327_v7 }
  0x27   :  { %295 = vmatprep.subr.bf16.mxu0 %v390_v0 }
  0x2a   :  { %296 = vmatpush3.bf16.msra.mxu0 %v328_v8 }
  0x2b   :  { %297 = vmatprep.subr.bf16.mxu0 %v390_v0 }
  0x2e   :  { %298 = vmatpush3.bf16.msra.mxu0 %v329_v9 }
  0x2f   :  { %299 = vmatprep.subr.bf16.mxu0 %v390_v0 }
  0x32   :  { %300 = vmatpush3.bf16.msra.mxu0 %v330_v10 }
  0x35   :  { %302 = vmatmul.mubr.bf16.vlgmr.msra.gmra.mrb[0].mxu0 %v36_v11 }
 0x108   :  { %v142_v15 = vpop.f32.mrb[0].mxu0 }
 0x109   :  { %v143_v16 = vadd.f32 %v255_v14, %v142_v15  ;;  %v303_v17 = vpop.f32.mrb[1].mxu0 }
 0x10a   :  { %v145_v18 = vpop.f32.mrb[2].mxu0 }
 0x10b   :  { %v148_v19 = vmax.f32 %v143_v16, 0.0  ;;  %v304_v20 = vpop.f32.mrb[3].mxu0 }
 0x10d   :  { %v149_v21 = vpack.c.bf16 %v148_v19, %v148_v19 }
 0x10f   :  { %314 = vmatmul.mubr.msk.bf16.vlgmr.msra.gmra.mrb[0].mxu1 %vm189_vm1, %v149_v21 }
 0x1e2   :  { %v227_v23 = vpop.f32.mrb[0].mxu1 }
 0x1e3   :  { %v228_v24 = vadd.f32 %v264_v22, %v227_v23  ;;  %v315_v25 = vpop.f32.mrb[1].mxu1 }
 0x1e4   :  { %v230_v26 = vpop.f32.mrb[2].mxu1 }
 0x1e5   :  { %v270_v27 = vmul.f32 -1.442695, %v228_v24  ;;  %v316_v28 = vpop.f32.mrb[3].mxu1 }
 0x1e7   :  { %335 = vpow2.f32 %v270_v27 }
 0x1f1   :  { %v336_v29 = vpop.eup %335 }
 0x1f2   :  { %v236_v30 = vadd.f32 1.0, %v336_v29 }
 0x1f4   :  { %337 = vrcp.f32 %v236_v30 }
 0x1fe   :  { %v338_v31 = vpop.eup %337 }
 0x1ff   :  { %239 = vst [vmem:[#allocation5] sm:$0xff] %v338_v31 }
 0x200   :  { %372 = shalt.err (!%p369_p12)
}
 0x201   :  { %s373_s21 = scalar_lea.hbm %s473_s5, 128 }
 0x202   :  { %p374_p13 = scmp.ne.s32.totalorder %s473_s5, %s373_s21  ;;  %p377_p0 = scmp.lt.u32.totalorder %s373_s21, %s473_s5 }
 0x204   :  { %p379_p1 = pnand %p377_p0, %p374_p13 }
 0x206   :  { %382 = shalt.err (!%p379_p1)
}
 0x207   :  { %249 = dma.vmem_to_hbm [thread:$0]  %s247_s3, 128, %s473_s5, [#allocation4]  }
 0x208   :  { %385 = dma.done.wait [#allocation4], 128  }
 0x209   :  { %386 = vsyncadd [#allocation4], 4294967168 }
 0x20a   :  { %253 = vsyncpa [#allocation3], 1 }
 0x20b   :  { %254 = vsyncpa [#allocation4], 1 }

</bundles_post_ra>
